<compile_context>
chip_gen: v7x
topology: tpu7x:2x2x1
jax: 0.10.0
libtpu: 0.0.40
codegen_flags: <defaults>
</compile_context>

<pallas_src>
import functools

import jax
import jax.numpy as jnp
from jax.experimental import pallas as pl
from jax.experimental.pallas import tpu as pltpu

EPS = 1e-5
SLOPE = 0.1
VMEM_LIMIT_BYTES = 32 * 1024 * 1024   # fits v5e/v6e/v7x; raise only if needed


# --------------------------- Pallas kernels ---------------------------------

def _write_folded_lhs(lhs_ref, x, NB, H, GW):
    """Assemble the folded-K conv LHS in a VMEM scratch.

    lhs_ref : (NB, H, 3*GW) f32 scratch.  Row h of image i ends up holding
              [row h-1 | row h | row h+1] of that image (the 3 vertical 3x3
              taps folded into K).  Only the two border strips are written with
              zeros -- every other location is fully overwritten every grid
              step, so there is no full-scratch memset and no reliance on
              scratch persistence (safe under megacore grid splitting).
    x       : (NB, H, GW) f32 value (GW = W*Cin_of_this_conv).
    """
    z = jnp.zeros((NB, 1, GW), jnp.float32)
    lhs_ref[:, 1:H, 0:GW] = x[:, 0:H - 1, :]           # tap kh=0: row h-1
    lhs_ref[:, 0:1, 0:GW] = z                           # top vertical pad
    lhs_ref[:, :, GW:2 * GW] = x                        # tap kh=1: row h
    lhs_ref[:, 0:H - 1, 2 * GW:3 * GW] = x[:, 1:H, :]   # tap kh=2: row h+1
    lhs_ref[:, H - 1:H, 2 * GW:3 * GW] = z              # bottom vertical pad


def _conv1_stats_kernel(x_ref, r_ref, c_ref, st_ref, lhs_ref, *, NB, H, WIN, WC):
    """conv1 of NB images as ONE folded-K MXU matmul + BN1 partial statistics.

    x_ref  : (NB, H, W*Cin)      f32  unpadded NHWC rows (lane = (w, cin))
    r_ref  : (3*W*Cin, W*Cout)   bf16 folded banded weights (vertical taps in K)
    c_ref  : (NB, H, W*Cout)     f32  conv output slab (lane-dense)
    st_ref : (1, 2, W*Cout)      f32  per-step sum / sum-of-squares
    lhs_ref: (NB, H, 3*W*Cin)    f32  scratch for the shifted-row LHS
    """
    _write_folded_lhs(lhs_ref, x_ref[...], NB, H, WIN)
    lhs = lhs_ref[...].reshape(NB * H, 3 * WIN).astype(jnp.bfloat16)
    acc = jnp.dot(lhs, r_ref[...], preferred_element_type=jnp.float32)
    c_ref[...] = acc.reshape(NB, H, WC)
    st_ref[0, 0:1, :] = jnp.sum(acc, axis=0, keepdims=True)
    st_ref[0, 1:2, :] = jnp.sum(acc * acc, axis=0, keepdims=True)


def _bn_act_conv2_stats_kernel(c1_ref, s1_ref, b1_ref, r_ref, c2_ref, st_ref,
                               lhs_ref, *, NB, H, WC):
    """Fused BN1 (folded scale/shift rows) + LeakyReLU + conv2 + BN2 partials.

    The activation never round-trips HBM: it is built in f32 vregs, assembled
    into the folded-K scratch, cast to bf16 once at the MXU operand.
    """
    y1 = c1_ref[...].reshape(NB * H, WC) * s1_ref[...] + b1_ref[...]
    a1 = jnp.where(y1 > 0, y1, SLOPE * y1)
    _write_folded_lhs(lhs_ref, a1.reshape(NB, H, WC), NB, H, WC)
    lhs = lhs_ref[...].reshape(NB * H, 3 * WC).astype(jnp.bfloat16)
    acc = jnp.dot(lhs, r_ref[...], preferred_element_type=jnp.float32)
    c2_ref[...] = acc.reshape(NB, H, WC)
    st_ref[0, 0:1, :] = jnp.sum(acc, axis=0, keepdims=True)
    st_ref[0, 1:2, :] = jnp.sum(acc * acc, axis=0, keepdims=True)


def _finalize_kernel(c1_ref, c2_ref, s1_ref, b1_ref, s2_ref, b2_ref, o_ref,
                     *, NB, H, WC):
    """y1 = BN1(conv1); y2 = BN2(conv2); out = lrelu(y2 + y1) + y1."""
    y1 = c1_ref[...].reshape(NB * H, WC) * s1_ref[...] + b1_ref[...]
    y2 = c2_ref[...].reshape(NB * H, WC) * s2_ref[...] + b2_ref[...]
    t = y2 + y1
    t = jnp.where(t > 0, t, SLOPE * t)
    o_ref[...] = (t + y1).reshape(NB, H, WC)


# --------------------------- wrapper / glue ----------------------------------

def _folded_weights(w, W):
    """(Cout, Cin, 3, 3) conv weight -> (3*W*Cin, W*Cout) folded banded matrix.

    R[kh*W*Cin + s*Cin + ci, wo*Cout + co] = w[co, ci, kh, s - wo + 1]
    (zero unless |s - wo| <= 1).  The LHS row for output row h is the
    concatenation of real rows h-1, h, h+1 (no horizontal pad columns needed:
    zero-padding contributes nothing to the conv)."""
    Cout, Cin = w.shape[0], w.shape[1]
    wt = jnp.transpose(w, (2, 3, 1, 0)).astype(jnp.float32)   # (kh, kw, ci, co)
    # sel[s, kw, wo] = 1  iff  s == wo + kw - 1
    sel = (jnp.arange(W)[:, None, None] ==
           (jnp.arange(W)[None, None, :] + jnp.arange(3)[None, :, None] - 1)
           ).astype(jnp.float32)
    r = jnp.einsum('skw,hkio->hsiwo', sel, wt)                # (3, W, Cin, W, Cout)
    return r.reshape(3 * W * Cin, W * Cout)


def _bn_scale_shift(stats, gamma, beta, n_pix, W, C):
    """Finish BN batch stats (tiny O(C) XLA math) -> (1, W*C) scale/shift rows.

    Kept in XLA deliberately: it is a couple of micro-fusions and stays exact
    f32, so the statistics pick up no MXU-operand rounding."""
    s = jnp.sum(stats, axis=0).reshape(2, W, C).sum(axis=1)   # (2, C)
    mean = s[0] / n_pix
    var = s[1] / n_pix - mean * mean                          # biased variance
    scale = gamma * jax.lax.rsqrt(var + EPS)
    shift = beta - mean * scale
    return (jnp.tile(scale, W).reshape(1, W * C),
            jnp.tile(shift, W).reshape(1, W * C))


def _pick_nb(n, h, max_rows=256):
    """Largest divisor of n with nb*h <= max_rows (fills the 256-row MXU)."""
    nb = 1
    for d in range(1, n + 1):
        if n % d == 0 and d * h <= max_rows:
            nb = d
    return nb


def resblock_forward(x_nchw, params):
    """ResBlock forward: (N, Cin, H, W) f32 -> (N, Cout, H, W) f32."""
    (w1, _b1, g1, be1, w2, _b2, g2, be2) = params
    # NOTE: conv biases are exactly cancelled by the batch-stat BatchNorm mean
    # subtraction, so they are (correctly) not used -- dead work removed.

    N, Cin, H, W = x_nchw.shape
    Cout = w1.shape[0]
    WIN, WC = W * Cin, W * Cout
    n_pix = N * H * W

    NB = _pick_nb(N, H)          # images per grid step -> MXU M = NB*H
    G = N // NB

    # NCHW -> NHWC (single XLA pass; the reshape is free).  The (w, c) pair is
    # flattened into the lane axis so every kernel slab is lane-dense
    # (W*Cout = 128 for this config -> unmasked vst).
    # TODO(synk): drop this transpose (and the one at the end) if the
    # surrounding model can stay NHWC.
    x = jnp.transpose(x_nchw, (0, 2, 3, 1)).astype(jnp.float32).reshape(N, H, WIN)

    # Folded bf16 banded weights (MXU operands; accumulation stays f32).
    # These scale O(W^2 * Cin * Cout): for much larger W/C add a K- or
    # output-W-tiled grid axis before they threaten v7x's 64 MiB VMEM.
    r1 = _folded_weights(w1, W).astype(jnp.bfloat16)          # (3*W*Cin,  W*Cout)
    r2 = _folded_weights(w2, W).astype(jnp.bfloat16)          # (3*W*Cout, W*Cout)

    cparams = pltpu.CompilerParams(
        dimension_semantics=("parallel",),          # shard grid steps across TCs
        vmem_limit_bytes=VMEM_LIMIT_BYTES)

    slab = pl.BlockSpec((NB, H, WC), lambda b: (b, 0, 0))
    row = pl.BlockSpec((1, WC), lambda b: (0, 0))
    stat = pl.BlockSpec((1, 2, WC), lambda b: (b, 0, 0))
    slab_shape = jax.ShapeDtypeStruct((N, H, WC), jnp.float32)
    stat_shape = jax.ShapeDtypeStruct((G, 2, WC), jnp.float32)

    # ---- stage 1: conv1 (one folded-K matmul, M = NB*H) + BN1 partial stats -
    c1, st1 = pl.pallas_call(
        functools.partial(_conv1_stats_kernel, NB=NB, H=H, WIN=WIN, WC=WC),
        grid=(G,),
        in_specs=[
            pl.BlockSpec((NB, H, WIN), lambda b: (b, 0, 0)),
            pl.BlockSpec((3 * WIN, WC), lambda b: (0, 0)),
        ],
        out_specs=[slab, stat],
        out_shape=[slab_shape, stat_shape],
        scratch_shapes=[pltpu.VMEM((NB, H, 3 * WIN), jnp.float32)],
        compiler_params=cparams,
    )(x, r1)

    s1row, b1row = _bn_scale_shift(st1, g1, be1, n_pix, W, Cout)

    # ---- stage 2: BN1 + LeakyReLU + conv2 + BN2 partial stats (fused) -------
    c2, st2 = pl.pallas_call(
        functools.partial(_bn_act_conv2_stats_kernel, NB=NB, H=H, WC=WC),
        grid=(G,),
        in_specs=[
            slab, row, row,
            pl.BlockSpec((3 * WC, WC), lambda b: (0, 0)),
        ],
        out_specs=[slab, stat],
        out_shape=[slab_shape, stat_shape],
        scratch_shapes=[pltpu.VMEM((NB, H, 3 * WC), jnp.float32)],
        compiler_params=cparams,
    )(c1, s1row, b1row, r2)

    s2row, b2row = _bn_scale_shift(st2, g2, be2, n_pix, W, Cout)

    # ---- stage 3: BN2 + residual add + LeakyReLU + residual add -------------
    out = pl.pallas_call(
        functools.partial(_finalize_kernel, NB=NB, H=H, WC=WC),
        grid=(G,),
        in_specs=[slab, slab, row, row, row, row],
        out_specs=slab,
        out_shape=slab_shape,
        compiler_params=cparams,
    )(c1, c2, s1row, b1row, s2row, b2row)

    out = out.reshape(N, H, W, Cout)
    return jnp.transpose(out, (0, 3, 1, 2))                   # NHWC -> NCHW


# --------------------------- pure-JAX reference ------------------------------

def _reference(x_nchw, params, matmul_dtype=jnp.float32):
    """PyTorch-equivalent ResBlock (training-mode BN, biased variance).
    matmul_dtype=bfloat16 mirrors the MXU operand rounding of the kernels."""
    (w1, b1, g1, be1, w2, b2, g2, be2) = params

    def conv_bn(x, w, b, g, be):
        y = jax.lax.conv_general_dilated(
            x.astype(matmul_dtype), w.astype(matmul_dtype),
            window_strides=(1, 1), padding=((1, 1), (1, 1)),
            dimension_numbers=("NCHW", "OIHW", "NCHW"),
            preferred_element_type=jnp.float32)
        y = y + b[None, :, None, None]
        mean = jnp.mean(y, axis=(0, 2, 3), keepdims=True)
        var = jnp.mean((y - mean) ** 2, axis=(0, 2, 3), keepdims=True)
        return (y - mean) * jax.lax.rsqrt(var + EPS) * g[None, :, None, None] \
            + be[None, :, None, None]

    act = lambda v: jnp.where(v > 0, v, SLOPE * v)
    y1 = conv_bn(x_nchw, w1, b1, g1, be1)
    a1 = act(y1)
    y2 = conv_bn(a1, w2, b2, g2, be2)
    return act(y2 + y1) + y1


# --------------------------- main --------------------------------------------

if __name__ == "__main__":
    N, Cin, Cout, H, W = 2, 4, 8, 16, 16

    key = jax.random.PRNGKey(0)
    ks = jax.random.split(key, 9)

    # Deterministic synthetic parameters (kaiming-like scale for conv weights).
    std1 = (2.0 / (9 * Cin * (1.0 + SLOPE ** 2))) ** 0.5
    std2 = (2.0 / (9 * Cout * (1.0 + SLOPE ** 2))) ** 0.5
    w1 = std1 * jax.random.normal(ks[0], (Cout, Cin, 3, 3), jnp.float32)
    b1 = 0.1 * jax.random.normal(ks[1], (Cout,), jnp.float32)
    g1 = 1.0 + 0.1 * jax.random.normal(ks[2], (Cout,), jnp.float32)
    be1 = 0.1 * jax.random.normal(ks[3], (Cout,), jnp.float32)
    w2 = std2 * jax.random.normal(ks[4], (Cout, Cout, 3, 3), jnp.float32)
    b2 = 0.1 * jax.random.normal(ks[5], (Cout,), jnp.float32)
    g2 = 1.0 + 0.1 * jax.random.normal(ks[6], (Cout,), jnp.float32)
    be2 = 0.1 * jax.random.normal(ks[7], (Cout,), jnp.float32)
    params = (w1, b1, g1, be1, w2, b2, g2, be2)

    x = jax.random.normal(ks[8], (N, Cin, H, W), jnp.float32)

    out = jax.block_until_ready(jax.jit(resblock_forward)(x, params))
    ref_bf = jax.block_until_ready(_reference(x, params, jnp.bfloat16))
    ref_32 = jax.block_until_ready(_reference(x, params, jnp.float32))

    assert out.shape == (N, Cout, H, W)
    err_bf = float(jnp.max(jnp.abs(out - ref_bf)))
    err_32 = float(jnp.max(jnp.abs(out - ref_32)))
    # Tight structural check vs. a reference that rounds the conv operands to
    # bf16 exactly like the MXU path (f32 accumulation).
    assert jnp.allclose(out, ref_bf, atol=5e-3, rtol=5e-3), \
        f"max|err| vs bf16-matched ref = {err_bf}"
    # Semantics check vs. the full-f32 PyTorch-equivalent reference; the looser
    # tolerance only covers bf16 rounding of the MXU operands.
    assert jnp.allclose(out, ref_32, atol=5e-2, rtol=5e-2), \
        f"max|err| vs f32 ref = {err_32}"

    print("KERNEL_OK")
</pallas_src>

<mosaic_0001>
module attributes {stable_mosaic.version = 11 : i64} {
  func.func @_conv1_stats_kernel(%arg0: i32, %arg1: memref<2x16x64xf32, #tpu.memory_space<vmem>>, %arg2: memref<192x128xbf16, #tpu.memory_space<vmem>>, %arg3: memref<2x16x128xf32, #tpu.memory_space<vmem>>, %arg4: memref<1x2x128xf32, #tpu.memory_space<vmem>>, %arg5: memref<2x16x192xf32, #tpu.memory_space<vmem>>) attributes {dimension_semantics = [#tpu.dimension_semantics<parallel>], iteration_bounds = array<i64: 1>, scalar_prefetch = 0 : i64, scratch_operands = 1 : i64, tpu.core_type = #tpu.core_type<tc>, window_params = [{transform_indices = @transform_0, window_bounds = array<i64: 2, 16, 64>}, {pipeline_mode = #tpu.pipeline_mode<synchronous>, transform_indices = @transform_1, window_bounds = array<i64: 192, 128>}, {transform_indices = @transform_2, window_bounds = array<i64: 2, 16, 128>}, {transform_indices = @transform_3, window_bounds = array<i64: 1, 2, 128>}]} {
    %c0 = arith.constant 0 : index
    %c0_0 = arith.constant 0 : index
    %c0_1 = arith.constant 0 : index
    %0 = vector.load %arg1[%c0, %c0_0, %c0_1] : memref<2x16x64xf32, #tpu.memory_space<vmem>>, vector<2x16x64xf32>
    %cst = arith.constant 0.000000e+00 : f32
    %1 = vector.broadcast %cst : f32 to vector<2x1x64xf32>
    %2 = vector.extract_strided_slice %0 {offsets = [0, 0, 0], sizes = [2, 15, 64], strides = [1, 1, 1]} : vector<2x16x64xf32> to vector<2x15x64xf32>
    %c0_2 = arith.constant 0 : index
    %c1 = arith.constant 1 : index
    %c0_3 = arith.constant 0 : index
    %3 = vector.load %arg5[%c0_2, %c1, %c0_3] : memref<2x16x192xf32, #tpu.memory_space<vmem>>, vector<2x15x64xf32>
    tpu.vector_store %arg5[%c0_2, %c1, %c0_3], %2 {strides = array<i32>} : memref<2x16x192xf32, #tpu.memory_space<vmem>>, vector<2x15x64xf32>,
    %c0_4 = arith.constant 0 : index
    %c0_5 = arith.constant 0 : index
    %c0_6 = arith.constant 0 : index
    %4 = vector.load %arg5[%c0_4, %c0_5, %c0_6] : memref<2x16x192xf32, #tpu.memory_space<vmem>>, vector<2x1x64xf32>
    tpu.vector_store %arg5[%c0_4, %c0_5, %c0_6], %1 {strides = array<i32>} : memref<2x16x192xf32, #tpu.memory_space<vmem>>, vector<2x1x64xf32>,
    %c0_7 = arith.constant 0 : index
    %c0_8 = arith.constant 0 : index
    %c64 = arith.constant 64 : index
    %5 = vector.load %arg5[%c0_7, %c0_8, %c64] : memref<2x16x192xf32, #tpu.memory_space<vmem>>, vector<2x16x64xf32>
    tpu.vector_store %arg5[%c0_7, %c0_8, %c64], %0 {strides = array<i32>} : memref<2x16x192xf32, #tpu.memory_space<vmem>>, vector<2x16x64xf32>,
    %6 = vector.extract_strided_slice %0 {offsets = [0, 1, 0], sizes = [2, 15, 64], strides = [1, 1, 1]} : vector<2x16x64xf32> to vector<2x15x64xf32>
    %c0_9 = arith.constant 0 : index
    %c0_10 = arith.constant 0 : index
    %c128 = arith.constant 128 : index
    %7 = vector.load %arg5[%c0_9, %c0_10, %c128] : memref<2x16x192xf32, #tpu.memory_space<vmem>>, vector<2x15x64xf32>
    tpu.vector_store %arg5[%c0_9, %c0_10, %c128], %6 {strides = array<i32>} : memref<2x16x192xf32, #tpu.memory_space<vmem>>, vector<2x15x64xf32>,
    %c0_11 = arith.constant 0 : index
    %c15 = arith.constant 15 : index
    %c128_12 = arith.constant 128 : index
    %8 = vector.load %arg5[%c0_11, %c15, %c128_12] : memref<2x16x192xf32, #tpu.memory_space<vmem>>, vector<2x1x64xf32>
    tpu.vector_store %arg5[%c0_11, %c15, %c128_12], %1 {strides = array<i32>} : memref<2x16x192xf32, #tpu.memory_space<vmem>>, vector<2x1x64xf32>,
    %c0_13 = arith.constant 0 : index
    %c0_14 = arith.constant 0 : index
    %c0_15 = arith.constant 0 : index
    %9 = vector.load %arg5[%c0_13, %c0_14, %c0_15] : memref<2x16x192xf32, #tpu.memory_space<vmem>>, vector<2x16x192xf32>
    %10 = vector.shape_cast %9 : vector<2x16x192xf32> to vector<32x192xf32>
    %11 = arith.truncf %10 : vector<32x192xf32> to vector<32x192xbf16>
    %c0_16 = arith.constant 0 : index
    %c0_17 = arith.constant 0 : index
    %12 = vector.load %arg2[%c0_16, %c0_17] : memref<192x128xbf16, #tpu.memory_space<vmem>>, vector<192x128xbf16>
    %cst_18 = arith.constant dense<0.000000e+00> : vector<32x128xf32>
    %13 = tpu.matmul %11, %12, %cst_18 {dimension_numbers = #tpu.dot_dimension_numbers<[1], [0], [0], [1], [0, 0, 1, 1], [], []>} : vector<32x192xbf16>, vector<192x128xbf16>, vector<32x128xf32> -> vector<32x128xf32>
    %14 = vector.shape_cast %13 : vector<32x128xf32> to vector<2x16x128xf32>
    %c0_19 = arith.constant 0 : index
    %c0_20 = arith.constant 0 : index
    %c0_21 = arith.constant 0 : index
    %15 = vector.load %arg3[%c0_19, %c0_20, %c0_21] : memref<2x16x128xf32, #tpu.memory_space<vmem>>, vector<2x16x128xf32>
    tpu.vector_store %arg3[%c0_19, %c0_20, %c0_21], %14 {strides = array<i32>} : memref<2x16x128xf32, #tpu.memory_space<vmem>>, vector<2x16x128xf32>,
    %cst_22 = arith.constant dense<0.000000e+00> : vector<128xf32>
    %16 = vector.multi_reduction <add>, %13, %cst_22 [0] : vector<32x128xf32> to vector<128xf32>
    %17 = vector.shape_cast %16 : vector<128xf32> to vector<1x128xf32>
    %c0_23 = arith.constant 0 : index
    %c0_24 = arith.constant 0 : index
    %c0_25 = arith.constant 0 : index
    %18 = vector.load %arg4[%c0_23, %c0_24, %c0_25] : memref<1x2x128xf32, #tpu.memory_space<vmem>>, vector<1x1x128xf32>
    %19 = vector.shape_cast %18 : vector<1x1x128xf32> to vector<1x128xf32>
    %20 = vector.shape_cast %17 : vector<1x128xf32> to vector<1x1x128xf32>
    tpu.vector_store %arg4[%c0_23, %c0_24, %c0_25], %20 {strides = array<i32>} : memref<1x2x128xf32, #tpu.memory_space<vmem>>, vector<1x1x128xf32>,
    %21 = arith.mulf %13, %13 : vector<32x128xf32>
    %cst_26 = arith.constant dense<0.000000e+00> : vector<128xf32>
    %22 = vector.multi_reduction <add>, %21, %cst_26 [0] : vector<32x128xf32> to vector<128xf32>
    %23 = vector.shape_cast %22 : vector<128xf32> to vector<1x128xf32>
    %c0_27 = arith.constant 0 : index
    %c1_28 = arith.constant 1 : index
    %c0_29 = arith.constant 0 : index
    %24 = vector.load %arg4[%c0_27, %c1_28, %c0_29] : memref<1x2x128xf32, #tpu.memory_space<vmem>>, vector<1x1x128xf32>
    %25 = vector.shape_cast %24 : vector<1x1x128xf32> to vector<1x128xf32>
    %26 = vector.shape_cast %23 : vector<1x128xf32> to vector<1x1x128xf32>
    tpu.vector_store %arg4[%c0_27, %c1_28, %c0_29], %26 {strides = array<i32>} : memref<1x2x128xf32, #tpu.memory_space<vmem>>, vector<1x1x128xf32>,
    return
  }
  func.func @transform_0(%arg0: i32) -> (i32, i32, i32) {
    %c0_i32 = arith.constant 0 : i32
    %c0_i32_0 = arith.constant 0 : i32
    %c0_i32_1 = arith.constant 0 : i32
    return %arg0, %c0_i32, %c0_i32_0 : i32, i32, i32
  }
  func.func @transform_1(%arg0: i32) -> (i32, i32) {
    %c0_i32 = arith.constant 0 : i32
    %c0_i32_0 = arith.constant 0 : i32
    %c0_i32_1 = arith.constant 0 : i32
    return %c0_i32, %c0_i32_0 : i32, i32
  }
  func.func @transform_2(%arg0: i32) -> (i32, i32, i32) {
    %c0_i32 = arith.constant 0 : i32
    %c0_i32_0 = arith.constant 0 : i32
    %c0_i32_1 = arith.constant 0 : i32
    return %arg0, %c0_i32, %c0_i32_0 : i32, i32, i32
  }
  func.func @transform_3(%arg0: i32) -> (i32, i32, i32) {
    %c0_i32 = arith.constant 0 : i32
    %c0_i32_0 = arith.constant 0 : i32
    %c0_i32_1 = arith.constant 0 : i32
    return %arg0, %c0_i32, %c0_i32_0 : i32, i32, i32
  }
}

module attributes {stable_mosaic.version = 11 : i64} {
  func.func @_bn_act_conv2_stats_kernel(%arg0: i32, %arg1: memref<2x16x128xf32, #tpu.memory_space<vmem>>, %arg2: memref<1x128xf32, #tpu.memory_space<vmem>>, %arg3: memref<1x128xf32, #tpu.memory_space<vmem>>, %arg4: memref<384x128xbf16, #tpu.memory_space<vmem>>, %arg5: memref<2x16x128xf32, #tpu.memory_space<vmem>>, %arg6: memref<1x2x128xf32, #tpu.memory_space<vmem>>, %arg7: memref<2x16x384xf32, #tpu.memory_space<vmem>>) attributes {dimension_semantics = [#tpu.dimension_semantics<parallel>], iteration_bounds = array<i64: 1>, scalar_prefetch = 0 : i64, scratch_operands = 1 : i64, tpu.core_type = #tpu.core_type<tc>, window_params = [{transform_indices = @transform_0, window_bounds = array<i64: 2, 16, 128>}, {pipeline_mode = #tpu.pipeline_mode<synchronous>, transform_indices = @transform_1, window_bounds = array<i64: 1, 128>}, {pipeline_mode = #tpu.pipeline_mode<synchronous>, transform_indices = @transform_2, window_bounds = array<i64: 1, 128>}, {pipeline_mode = #tpu.pipeline_mode<synchronous>, transform_indices = @transform_3, window_bounds = array<i64: 384, 128>}, {transform_indices = @transform_4, window_bounds = array<i64: 2, 16, 128>}, {transform_indices = @transform_5, window_bounds = array<i64: 1, 2, 128>}]} {
    %c0 = arith.constant 0 : index
    %c0_0 = arith.constant 0 : index
    %c0_1 = arith.constant 0 : index
    %0 = vector.load %arg1[%c0, %c0_0, %c0_1] : memref<2x16x128xf32, #tpu.memory_space<vmem>>, vector<2x16x128xf32>
    %1 = vector.shape_cast %0 : vector<2x16x128xf32> to vector<32x128xf32>
    %c0_2 = arith.constant 0 : index
    %c0_3 = arith.constant 0 : index
    %2 = vector.load %arg2[%c0_2, %c0_3] : memref<1x128xf32, #tpu.memory_space<vmem>>, vector<1x128xf32>
    %3 = vector.broadcast %2 : vector<1x128xf32> to vector<32x128xf32>
    %4 = arith.mulf %1, %3 : vector<32x128xf32>
    %c0_4 = arith.constant 0 : index
    %c0_5 = arith.constant 0 : index
    %5 = vector.load %arg3[%c0_4, %c0_5] : memref<1x128xf32, #tpu.memory_space<vmem>>, vector<1x128xf32>
    %6 = vector.broadcast %5 : vector<1x128xf32> to vector<32x128xf32>
    %7 = arith.addf %4, %6 : vector<32x128xf32>
    %cst = arith.constant 0.000000e+00 : f32
    %8 = vector.broadcast %cst : f32 to vector<32x128xf32>
    %9 = arith.cmpf ogt, %7, %8 : vector<32x128xf32>
    %cst_6 = arith.constant 1.000000e-01 : f32
    %10 = vector.broadcast %cst_6 : f32 to vector<32x128xf32>
    %11 = arith.mulf %10, %7 : vector<32x128xf32>
    %12 = arith.select %9, %7, %11 : vector<32x128xi1>, vector<32x128xf32>
    %13 = vector.shape_cast %12 : vector<32x128xf32> to vector<2x16x128xf32>
    %cst_7 = arith.constant 0.000000e+00 : f32
    %14 = vector.broadcast %cst_7 : f32 to vector<2x1x128xf32>
    %15 = vector.extract_strided_slice %13 {offsets = [0, 0, 0], sizes = [2, 15, 128], strides = [1, 1, 1]} : vector<2x16x128xf32> to vector<2x15x128xf32>
    %c0_8 = arith.constant 0 : index
    %c1 = arith.constant 1 : index
    %c0_9 = arith.constant 0 : index
    %16 = vector.load %arg7[%c0_8, %c1, %c0_9] : memref<2x16x384xf32, #tpu.memory_space<vmem>>, vector<2x15x128xf32>
    tpu.vector_store %arg7[%c0_8, %c1, %c0_9], %15 {strides = array<i32>} : memref<2x16x384xf32, #tpu.memory_space<vmem>>, vector<2x15x128xf32>,
    %c0_10 = arith.constant 0 : index
    %c0_11 = arith.constant 0 : index
    %c0_12 = arith.constant 0 : index
    %17 = vector.load %arg7[%c0_10, %c0_11, %c0_12] : memref<2x16x384xf32, #tpu.memory_space<vmem>>, vector<2x1x128xf32>
    tpu.vector_store %arg7[%c0_10, %c0_11, %c0_12], %14 {strides = array<i32>} : memref<2x16x384xf32, #tpu.memory_space<vmem>>, vector<2x1x128xf32>,
    %c0_13 = arith.constant 0 : index
    %c0_14 = arith.constant 0 : index
    %c128 = arith.constant 128 : index
    %18 = vector.load %arg7[%c0_13, %c0_14, %c128] : memref<2x16x384xf32, #tpu.memory_space<vmem>>, vector<2x16x128xf32>
    tpu.vector_store %arg7[%c0_13, %c0_14, %c128], %13 {strides = array<i32>} : memref<2x16x384xf32, #tpu.memory_space<vmem>>, vector<2x16x128xf32>,
    %19 = vector.extract_strided_slice %13 {offsets = [0, 1, 0], sizes = [2, 15, 128], strides = [1, 1, 1]} : vector<2x16x128xf32> to vector<2x15x128xf32>
    %c0_15 = arith.constant 0 : index
    %c0_16 = arith.constant 0 : index
    %c256 = arith.constant 256 : index
    %20 = vector.load %arg7[%c0_15, %c0_16, %c256] : memref<2x16x384xf32, #tpu.memory_space<vmem>>, vector<2x15x128xf32>
    tpu.vector_store %arg7[%c0_15, %c0_16, %c256], %19 {strides = array<i32>} : memref<2x16x384xf32, #tpu.memory_space<vmem>>, vector<2x15x128xf32>,
    %c0_17 = arith.constant 0 : index
    %c15 = arith.constant 15 : index
    %c256_18 = arith.constant 256 : index
    %21 = vector.load %arg7[%c0_17, %c15, %c256_18] : memref<2x16x384xf32, #tpu.memory_space<vmem>>, vector<2x1x128xf32>
    tpu.vector_store %arg7[%c0_17, %c15, %c256_18], %14 {strides = array<i32>} : memref<2x16x384xf32, #tpu.memory_space<vmem>>, vector<2x1x128xf32>,
    %c0_19 = arith.constant 0 : index
    %c0_20 = arith.constant 0 : index
    %c0_21 = arith.constant 0 : index
    %22 = vector.load %arg7[%c0_19, %c0_20, %c0_21] : memref<2x16x384xf32, #tpu.memory_space<vmem>>, vector<2x16x384xf32>
    %23 = vector.shape_cast %22 : vector<2x16x384xf32> to vector<32x384xf32>
    %24 = arith.truncf %23 : vector<32x384xf32> to vector<32x384xbf16>
    %c0_22 = arith.constant 0 : index
    %c0_23 = arith.constant 0 : index
    %25 = vector.load %arg4[%c0_22, %c0_23] : memref<384x128xbf16, #tpu.memory_space<vmem>>, vector<384x128xbf16>
    %cst_24 = arith.constant dense<0.000000e+00> : vector<32x128xf32>
    %26 = tpu.matmul %24, %25, %cst_24 {dimension_numbers = #tpu.dot_dimension_numbers<[1], [0], [0], [1], [0, 0, 1, 1], [], []>} : vector<32x384xbf16>, vector<384x128xbf16>, vector<32x128xf32> -> vector<32x128xf32>
    %27 = vector.shape_cast %26 : vector<32x128xf32> to vector<2x16x128xf32>
    %c0_25 = arith.constant 0 : index
    %c0_26 = arith.constant 0 : index
    %c0_27 = arith.constant 0 : index
    %28 = vector.load %arg5[%c0_25, %c0_26, %c0_27] : memref<2x16x128xf32, #tpu.memory_space<vmem>>, vector<2x16x128xf32>
    tpu.vector_store %arg5[%c0_25, %c0_26, %c0_27], %27 {strides = array<i32>} : memref<2x16x128xf32, #tpu.memory_space<vmem>>, vector<2x16x128xf32>,
    %cst_28 = arith.constant dense<0.000000e+00> : vector<128xf32>
    %29 = vector.multi_reduction <add>, %26, %cst_28 [0] : vector<32x128xf32> to vector<128xf32>
    %30 = vector.shape_cast %29 : vector<128xf32> to vector<1x128xf32>
    %c0_29 = arith.constant 0 : index
    %c0_30 = arith.constant 0 : index
    %c0_31 = arith.constant 0 : index
    %31 = vector.load %arg6[%c0_29, %c0_30, %c0_31] : memref<1x2x128xf32, #tpu.memory_space<vmem>>, vector<1x1x128xf32>
    %32 = vector.shape_cast %31 : vector<1x1x128xf32> to vector<1x128xf32>
    %33 = vector.shape_cast %30 : vector<1x128xf32> to vector<1x1x128xf32>
    tpu.vector_store %arg6[%c0_29, %c0_30, %c0_31], %33 {strides = array<i32>} : memref<1x2x128xf32, #tpu.memory_space<vmem>>, vector<1x1x128xf32>,
    %34 = arith.mulf %26, %26 : vector<32x128xf32>
    %cst_32 = arith.constant dense<0.000000e+00> : vector<128xf32>
    %35 = vector.multi_reduction <add>, %34, %cst_32 [0] : vector<32x128xf32> to vector<128xf32>
    %36 = vector.shape_cast %35 : vector<128xf32> to vector<1x128xf32>
    %c0_33 = arith.constant 0 : index
    %c1_34 = arith.constant 1 : index
    %c0_35 = arith.constant 0 : index
    %37 = vector.load %arg6[%c0_33, %c1_34, %c0_35] : memref<1x2x128xf32, #tpu.memory_space<vmem>>, vector<1x1x128xf32>
    %38 = vector.shape_cast %37 : vector<1x1x128xf32> to vector<1x128xf32>
    %39 = vector.shape_cast %36 : vector<1x128xf32> to vector<1x1x128xf32>
    tpu.vector_store %arg6[%c0_33, %c1_34, %c0_35], %39 {strides = array<i32>} : memref<1x2x128xf32, #tpu.memory_space<vmem>>, vector<1x1x128xf32>,
    return
  }
  func.func @transform_0(%arg0: i32) -> (i32, i32, i32) {
    %c0_i32 = arith.constant 0 : i32
    %c0_i32_0 = arith.constant 0 : i32
    %c0_i32_1 = arith.constant 0 : i32
    return %arg0, %c0_i32, %c0_i32_0 : i32, i32, i32
  }
  func.func @transform_1(%arg0: i32) -> (i32, i32) {
    %c0_i32 = arith.constant 0 : i32
    %c0_i32_0 = arith.constant 0 : i32
    %c0_i32_1 = arith.constant 0 : i32
    return %c0_i32, %c0_i32_0 : i32, i32
  }
  func.func @transform_2(%arg0: i32) -> (i32, i32) {
    %c0_i32 = arith.constant 0 : i32
    %c0_i32_0 = arith.constant 0 : i32
    %c0_i32_1 = arith.constant 0 : i32
    return %c0_i32, %c0_i32_0 : i32, i32
  }
  func.func @transform_3(%arg0: i32) -> (i32, i32) {
    %c0_i32 = arith.constant 0 : i32
    %c0_i32_0 = arith.constant 0 : i32
    %c0_i32_1 = arith.constant 0 : i32
    return %c0_i32, %c0_i32_0 : i32, i32
  }
  func.func @transform_4(%arg0: i32) -> (i32, i32, i32) {
    %c0_i32 = arith.constant 0 : i32
    %c0_i32_0 = arith.constant 0 : i32
    %c0_i32_1 = arith.constant 0 : i32
    return %arg0, %c0_i32, %c0_i32_0 : i32, i32, i32
  }
  func.func @transform_5(%arg0: i32) -> (i32, i32, i32) {
    %c0_i32 = arith.constant 0 : i32
    %c0_i32_0 = arith.constant 0 : i32
    %c0_i32_1 = arith.constant 0 : i32
    return %arg0, %c0_i32, %c0_i32_0 : i32, i32, i32
  }
}

module attributes {stable_mosaic.version = 11 : i64} {
  func.func @_finalize_kernel(%arg0: i32, %arg1: memref<2x16x128xf32, #tpu.memory_space<vmem>>, %arg2: memref<2x16x128xf32, #tpu.memory_space<vmem>>, %arg3: memref<1x128xf32, #tpu.memory_space<vmem>>, %arg4: memref<1x128xf32, #tpu.memory_space<vmem>>, %arg5: memref<1x128xf32, #tpu.memory_space<vmem>>, %arg6: memref<1x128xf32, #tpu.memory_space<vmem>>, %arg7: memref<2x16x128xf32, #tpu.memory_space<vmem>>) attributes {dimension_semantics = [#tpu.dimension_semantics<parallel>], iteration_bounds = array<i64: 1>, scalar_prefetch = 0 : i64, scratch_operands = 0 : i64, tpu.core_type = #tpu.core_type<tc>, window_params = [{transform_indices = @transform_0, window_bounds = array<i64: 2, 16, 128>}, {transform_indices = @transform_1, window_bounds = array<i64: 2, 16, 128>}, {pipeline_mode = #tpu.pipeline_mode<synchronous>, transform_indices = @transform_2, window_bounds = array<i64: 1, 128>}, {pipeline_mode = #tpu.pipeline_mode<synchronous>, transform_indices = @transform_3, window_bounds = array<i64: 1, 128>}, {pipeline_mode = #tpu.pipeline_mode<synchronous>, transform_indices = @transform_4, window_bounds = array<i64: 1, 128>}, {pipeline_mode = #tpu.pipeline_mode<synchronous>, transform_indices = @transform_5, window_bounds = array<i64: 1, 128>}, {transform_indices = @transform_6, window_bounds = array<i64: 2, 16, 128>}]} {
    %c0 = arith.constant 0 : index
    %c0_0 = arith.constant 0 : index
    %c0_1 = arith.constant 0 : index
    %0 = vector.load %arg1[%c0, %c0_0, %c0_1] : memref<2x16x128xf32, #tpu.memory_space<vmem>>, vector<2x16x128xf32>
    %1 = vector.shape_cast %0 : vector<2x16x128xf32> to vector<32x128xf32>
    %c0_2 = arith.constant 0 : index
    %c0_3 = arith.constant 0 : index
    %2 = vector.load %arg3[%c0_2, %c0_3] : memref<1x128xf32, #tpu.memory_space<vmem>>, vector<1x128xf32>
    %3 = vector.broadcast %2 : vector<1x128xf32> to vector<32x128xf32>
    %4 = arith.mulf %1, %3 : vector<32x128xf32>
    %c0_4 = arith.constant 0 : index
    %c0_5 = arith.constant 0 : index
    %5 = vector.load %arg4[%c0_4, %c0_5] : memref<1x128xf32, #tpu.memory_space<vmem>>, vector<1x128xf32>
    %6 = vector.broadcast %5 : vector<1x128xf32> to vector<32x128xf32>
    %7 = arith.addf %4, %6 : vector<32x128xf32>
    %c0_6 = arith.constant 0 : index
    %c0_7 = arith.constant 0 : index
    %c0_8 = arith.constant 0 : index
    %8 = vector.load %arg2[%c0_6, %c0_7, %c0_8] : memref<2x16x128xf32, #tpu.memory_space<vmem>>, vector<2x16x128xf32>
    %9 = vector.shape_cast %8 : vector<2x16x128xf32> to vector<32x128xf32>
    %c0_9 = arith.constant 0 : index
    %c0_10 = arith.constant 0 : index
    %10 = vector.load %arg5[%c0_9, %c0_10] : memref<1x128xf32, #tpu.memory_space<vmem>>, vector<1x128xf32>
    %11 = vector.broadcast %10 : vector<1x128xf32> to vector<32x128xf32>
    %12 = arith.mulf %9, %11 : vector<32x128xf32>
    %c0_11 = arith.constant 0 : index
    %c0_12 = arith.constant 0 : index
    %13 = vector.load %arg6[%c0_11, %c0_12] : memref<1x128xf32, #tpu.memory_space<vmem>>, vector<1x128xf32>
    %14 = vector.broadcast %13 : vector<1x128xf32> to vector<32x128xf32>
    %15 = arith.addf %12, %14 : vector<32x128xf32>
    %16 = arith.addf %15, %7 : vector<32x128xf32>
    %cst = arith.constant 0.000000e+00 : f32
    %17 = vector.broadcast %cst : f32 to vector<32x128xf32>
    %18 = arith.cmpf ogt, %16, %17 : vector<32x128xf32>
    %cst_13 = arith.constant 1.000000e-01 : f32
    %19 = vector.broadcast %cst_13 : f32 to vector<32x128xf32>
    %20 = arith.mulf %19, %16 : vector<32x128xf32>
    %21 = arith.select %18, %16, %20 : vector<32x128xi1>, vector<32x128xf32>
    %22 = arith.addf %21, %7 : vector<32x128xf32>
    %23 = vector.shape_cast %22 : vector<32x128xf32> to vector<2x16x128xf32>
    %c0_14 = arith.constant 0 : index
    %c0_15 = arith.constant 0 : index
    %c0_16 = arith.constant 0 : index
    %24 = vector.load %arg7[%c0_14, %c0_15, %c0_16] : memref<2x16x128xf32, #tpu.memory_space<vmem>>, vector<2x16x128xf32>
    tpu.vector_store %arg7[%c0_14, %c0_15, %c0_16], %23 {strides = array<i32>} : memref<2x16x128xf32, #tpu.memory_space<vmem>>, vector<2x16x128xf32>,
    return
  }
  func.func @transform_0(%arg0: i32) -> (i32, i32, i32) {
    %c0_i32 = arith.constant 0 : i32
    %c0_i32_0 = arith.constant 0 : i32
    %c0_i32_1 = arith.constant 0 : i32
    return %arg0, %c0_i32, %c0_i32_0 : i32, i32, i32
  }
  func.func @transform_1(%arg0: i32) -> (i32, i32, i32) {
    %c0_i32 = arith.constant 0 : i32
    %c0_i32_0 = arith.constant 0 : i32
    %c0_i32_1 = arith.constant 0 : i32
    return %arg0, %c0_i32, %c0_i32_0 : i32, i32, i32
  }
  func.func @transform_2(%arg0: i32) -> (i32, i32) {
    %c0_i32 = arith.constant 0 : i32
    %c0_i32_0 = arith.constant 0 : i32
    %c0_i32_1 = arith.constant 0 : i32
    return %c0_i32, %c0_i32_0 : i32, i32
  }
  func.func @transform_3(%arg0: i32) -> (i32, i32) {
    %c0_i32 = arith.constant 0 : i32
    %c0_i32_0 = arith.constant 0 : i32
    %c0_i32_1 = arith.constant 0 : i32
    return %c0_i32, %c0_i32_0 : i32, i32
  }
  func.func @transform_4(%arg0: i32) -> (i32, i32) {
    %c0_i32 = arith.constant 0 : i32
    %c0_i32_0 = arith.constant 0 : i32
    %c0_i32_1 = arith.constant 0 : i32
    return %c0_i32, %c0_i32_0 : i32, i32
  }
  func.func @transform_5(%arg0: i32) -> (i32, i32) {
    %c0_i32 = arith.constant 0 : i32
    %c0_i32_0 = arith.constant 0 : i32
    %c0_i32_1 = arith.constant 0 : i32
    return %c0_i32, %c0_i32_0 : i32, i32
  }
  func.func @transform_6(%arg0: i32) -> (i32, i32, i32) {
    %c0_i32 = arith.constant 0 : i32
    %c0_i32_0 = arith.constant 0 : i32
    %c0_i32_1 = arith.constant 0 : i32
    return %arg0, %c0_i32, %c0_i32_0 : i32, i32, i32
  }
}

</mosaic_0001>

<bundles_post_ra>
// kernel: tile.28
= control target key start
LH: loop header
LB: loop body
LE: loop exit
PB: predicated region body
PF: predicated region fallthrough
CT: control target
= control target key end

     0   :  { %s28_s0 = inlined_call_operand.vmem [shape: f32[8], index: 0, kind: input, shape index: {}]   ;;  %s29_s1 = inlined_call_operand.vmem [shape: f32[16,8], index: 1, kind: output, shape index: {}]  }
   0x1   :  { %v4_v0 = vld [vmem:[%s28_s0] ss:$0 sm:$0xff] }
   0x2   :  { %5 = vst [vmem:[%s29_s1] sm:$0xff] %v4_v0  ;;  %8 = vst [vmem:[%s29_s1 + $0x8] sm:$0xff] %v4_v0 }

// kernel: tile.29
= control target key start
LH: loop header
LB: loop body
LE: loop exit
PB: predicated region body
PF: predicated region fallthrough
CT: control target
= control target key end

     0   :  { %s131_s10 = smov 120   ;;  %s132_s11 = smov 104   ;;  %vm3_vm0 = vcmask 64512   ;;  %vm9_vm1 = vcmask 1048512   ;;  %vm15_vm2 = vcmask 982912   ;;  %vm21_vm3 = vcmask 917312   ;;  %s207_s0 = inlined_call_operand.vmem [shape: f32[16,8], index: 0, kind: input, shape index: {}]   ;;  %s208_s1 = inlined_call_operand.vmem [shape: f32[1,128], index: 1, kind: output, shape index: {}]  }
   0x1   :  { %v101_v0 = vld [vmem:[%s207_s0 + $0xf] sm:$0x1]   ;;  %v103_v1 = vld [vmem:[%s207_s0 + $0xd] sm:$0x1]   ;;  %v102_v2 = vld [vmem:[%s207_s0 + $0xe] sm:$0x1]  }
   0x2   :  { %7 = vrot.lane.b32.xlu0 %v101_v0, %s131_s10  ;;  %19 = vrot.lane.b32.xlu1 %v103_v1, %s132_s11  ;;  %v104_v3 = vld [vmem:[%s207_s0 + $0xc] sm:$0x1]   ;;  %s133_s16 = smov 112   ;;  %s134_s17 = smov 96   ;;  %v105_v4 = vld [vmem:[%s207_s0 + $0xb] sm:$0x1]  }
   0x3   :  { %v106_v5 = vld [vmem:[%s207_s0 + $0xa] sm:$0x1]   ;;  %v2_v6 = vld [vmem:[%s207_s0] sm:$0x1]   ;;  %s135_s24 = smov 88   ;;  %s136_s25 = smov 80  }
   0x4   :  { %4 = vst.msk [vmem:[#allocation0] sm:$0x1] %vm3_vm0, %v2_v6   ;;  %v107_v7 = vld [vmem:[%s207_s0 + $0x9] sm:$0x1]   ;;  %v108_v8 = vld [vmem:[%s207_s0 + $0x8] sm:$0x1]  }
   0x5   :  { %s137_s30 = smov 72   ;;  %s138_s2 = smov 64   ;;  %v109_v9 = vld [vmem:[%s207_s0 + $0x7] sm:$0x1]   ;;  %v110_v10 = vld [vmem:[%s207_s0 + $0x6] sm:$0x1]  }
   0x6   :  { %13 = vrot.lane.b32.xlu0 %v102_v2, %s133_s16  ;;  %25 = vrot.lane.b32.xlu1 %v104_v3, %s134_s17  ;;  %s139_s7 = smov 56   ;;  %s140_s8 = smov 48   ;;  %v111_v11 = vld [vmem:[%s207_s0 + $0x5] sm:$0x1]   ;;  %v112_v12 = vld [vmem:[%s207_s0 + $0x4] sm:$0x1]  }
   0x7   :  { %s141_s13 = smov 40   ;;  %s142_s14 = smov 32   ;;  %v113_v13 = vld [vmem:[%s207_s0 + $0x3] sm:$0x1]   ;;  %v114_v14 = vld [vmem:[%s207_s0 + $0x2] sm:$0x1]  }
   0x8   :  { %s143_s19 = smov 24   ;;  %s144_s20 = smov 16   ;;  %v115_v15 = vld [vmem:[%s207_s0 + $0x1] sm:$0x1]   ;;  %vm27_vm4 = vcmask 851712   ;;  %vm33_vm5 = vcmask 786112  }
   0x9   :  { %s145_s0 = smov 8   ;;  %vm39_vm6 = vcmask 720512   ;;  %vm45_vm7 = vcmask 654912   ;;  %vm51_vm8 = vcmask 589312   ;;  %vm57_vm9 = vcmask 523712  }
   0xa   :  { %31 = vrot.lane.b32.xlu0 %v105_v4, %s135_s24  ;;  %37 = vrot.lane.b32.xlu1 %v106_v5, %s136_s25  ;;  %vm63_vm10 = vcmask 458112   ;;  %vm69_vm11 = vcmask 392512   ;;  %vm75_vm12 = vcmask 326912   ;;  %vm81_vm13 = vcmask 261312  }
   0xb   :  { %vm87_vm14 = vcmask 195712   ;;  %vm93_vm15 = vcmask 130112  }
   0xe   :  { %43 = vrot.lane.b32.xlu0 %v107_v7, %s137_s30  ;;  %49 = vrot.lane.b32.xlu1 %v108_v8, %s138_s2 }
  0x12   :  { %55 = vrot.lane.b32.xlu0 %v109_v9, %s139_s7  ;;  %61 = vrot.lane.b32.xlu1 %v110_v10, %s140_s8 }
  0x16   :  { %67 = vrot.lane.b32.xlu0 %v111_v11, %s141_s13  ;;  %73 = vrot.lane.b32.xlu1 %v112_v12, %s142_s14 }
  0x1a   :  { %79 = vrot.lane.b32.xlu0 %v113_v13, %s143_s19  ;;  %85 = vrot.lane.b32.xlu1 %v114_v14, %s144_s20 }
  0x1e   :  { %91 = vrot.lane.b32.xlu0 %v115_v15, %s145_s0 }
  0x74   :  { %v8_v16 = vpop.permute.xlu0 %7   ;;  %v20_v17 = vpop.permute.xlu1 %19  }
  0x75   :  { %10 = vst.msk [vmem:[#allocation0] sm:$0x1] %vm9_vm1, %v8_v16  }
  0x78   :  { %v14_v18 = vpop.permute.xlu0 %13   ;;  %v26_v19 = vpop.permute.xlu1 %25  }
  0x79   :  { %16 = vst.msk [vmem:[#allocation0] sm:$0x1] %vm15_vm2, %v14_v18  }
  0x7a   :  { %22 = vst.msk [vmem:[#allocation0] sm:$0x1] %vm21_vm3, %v20_v17  }
  0x7b   :  { %28 = vst.msk [vmem:[#allocation0] sm:$0x1] %vm27_vm4, %v26_v19  }
  0x7c   :  { %v32_v20 = vpop.permute.xlu0 %31   ;;  %v38_v21 = vpop.permute.xlu1 %37  }
  0x7d   :  { %34 = vst.msk [vmem:[#allocation0] sm:$0x1] %vm33_vm5, %v32_v20  }
  0x7e   :  { %40 = vst.msk [vmem:[#allocation0] sm:$0x1] %vm39_vm6, %v38_v21  }
  0x80   :  { %v44_v22 = vpop.permute.xlu0 %43   ;;  %v50_v23 = vpop.permute.xlu1 %49  }
  0x81   :  { %46 = vst.msk [vmem:[#allocation0] sm:$0x1] %vm45_vm7, %v44_v22  }
  0x82   :  { %52 = vst.msk [vmem:[#allocation0] sm:$0x1] %vm51_vm8, %v50_v23  }
  0x84   :  { %v56_v24 = vpop.permute.xlu0 %55   ;;  %v62_v25 = vpop.permute.xlu1 %61  }
  0x85   :  { %58 = vst.msk [vmem:[#allocation0] sm:$0x1] %vm57_vm9, %v56_v24  }
  0x86   :  { %64 = vst.msk [vmem:[#allocation0] sm:$0x1] %vm63_vm10, %v62_v25  }
  0x88   :  { %v68_v26 = vpop.permute.xlu0 %67   ;;  %v74_v27 = vpop.permute.xlu1 %73  }
  0x89   :  { %70 = vst.msk [vmem:[#allocation0] sm:$0x1] %vm69_vm11, %v68_v26  }
  0x8a   :  { %76 = vst.msk [vmem:[#allocation0] sm:$0x1] %vm75_vm12, %v74_v27  }
  0x8c   :  { %v80_v28 = vpop.permute.xlu0 %79   ;;  %v86_v29 = vpop.permute.xlu1 %85  }
  0x8d   :  { %82 = vst.msk [vmem:[#allocation0] sm:$0x1] %vm81_vm13, %v80_v28  }
  0x8e   :  { %88 = vst.msk [vmem:[#allocation0] sm:$0x1] %vm87_vm14, %v86_v29  }
  0x90   :  { %v92_v30 = vpop.permute.xlu0 %91  }
  0x91   :  { %94 = vst.msk [vmem:[#allocation0] sm:$0x1] %vm93_vm15, %v92_v30  }
  0x98   :  { %v98_v31 = vld [vmem:[#allocation0] sm:$0x1] }
  0x99   :  { %100 = vst [vmem:[%s208_s1] sm:$0x1] %v98_v31 }

// kernel: resblock_forward.3
= control target key start
LH: loop header
LB: loop body
LE: loop exit
PB: predicated region body
PF: predicated region fallthrough
CT: control target
= control target key end

     0   :  { %vm33_vm0 = vcmask 523265   ;;  %vm59_vm1 = vcmask 1046528   ;;  %vm71_vm2 = vcmask 522240   ;;  %v329_v3 = vmov 0   ;;  %s330_s18 = smov 64   ;;  %s458_s0 = inlined_call_operand.vmem [shape: f32[2,16,64], index: 0, kind: input, shape index: {}]   ;;  %s459_s1 = inlined_call_operand.vmem [shape: bf16[192,128], index: 1, kind: input, shape index: {}]   ;;  %s460_s2 = inlined_call_operand.vmem [shape: f32[2,16,128], index: 2, kind: output, shape index: {0}]   ;;  %s461_s3 = inlined_call_operand.vmem [shape: f32[1,2,128], index: 3, kind: output, shape index: {1}]  }
   0x1   :  { %v16_v0 = vld [vmem:[%s458_s0 + $0x10] sm:$0xff]  ;;  %v14_v1 = vld [vmem:[%s458_s0] sm:$0xff]  ;;  %v17_v2 = vld [vmem:[%s458_s0 + $0x18] sm:$0xff]  ;;  %191 = vmatprep.subr.bf16.mxu0 %v329_v3  ;;  %290 = vmatprep.subr.bf16.mxu1 %v329_v3  ;;  %vm39_vm3 = vcmask 516096   ;;  %v331_v10 = vmov 0.0   ;;  %vm22_vm4 = vcmask 1040384  }
   0x2   :  { %46 = vrot.lane.b32.xlu1 %v16_v0, %s330_s18  ;;  %v26_v4 = vrot.slane %v16_v0, 7  ;;  %v63_v5 = vrot.slane %v16_v0, 1  ;;  %42 = vrot.lane.b32.xlu0 %v14_v1, %s330_s18  ;;  %v23_v6 = vrot.slane %v14_v1, 7  ;;  %v60_v7 = vrot.slane %v14_v1, 1  ;;  %v15_v8 = vld [vmem:[%s458_s0 + $0x8] sm:$0xff]  ;;  %v317_v9 = vld [vmem:[%s459_s1] sm:$0xff]  }
   0x3   :  { %41 = vst.msk [vmem:[#allocation2 + $0x20] sm:$0x1] %vm39_vm3, %v331_v10  ;;  %75 = vst.msk [vmem:[#allocation2 + $0x1f] sm:$0x1] %vm39_vm3, %v331_v10  ;;  %v27_v11 = vrot.slane %v17_v2, 7  ;;  %v64_v12 = vrot.slane %v17_v2, 1  ;;  %192 = vmatpush1.bf16.msra.mxu0 %v317_v9  ;;  %302 = vmatpush1.bf16.msra.mxu1 %v317_v9 }
   0x4   :  { %76 = vst.msk [vmem:[#allocation2 + $0x3f] sm:$0x1] %vm39_vm3, %v331_v10  ;;  %40 = vst.msk [vmem:[#allocation2] sm:$0x1] %vm39_vm3, %v331_v10  ;;  %v24_v13 = vrot.slane %v15_v8, 7  ;;  %v61_v14 = vrot.slane %v15_v8, 1  ;;  %193 = vmatprep.subr.bf16.mxu0 %v329_v3  ;;  %291 = vmatprep.subr.bf16.mxu1 %v329_v3 }
   0x5   :  { %37 = vst.msk [vmem:[#allocation2 + $0x20] sm:$0xfe] %vm33_vm0, %v26_v4  ;;  %34 = vst.msk [vmem:[#allocation2] sm:$0xfe] %vm33_vm0, %v23_v6  ;;  %v65_v15 = vsel %vm59_vm1, %v63_v5, %v64_v12  ;;  %v318_v17 = vld [vmem:[%s459_s1 + $0x8] sm:$0xff]   ;;  %vm35_vm5 = vcmask 523264   ;;  %v28_v18 = vsel %vm22_vm4, %v26_v4, %v27_v11 }
   0x6   :  { %74 = vst.msk [vmem:[#allocation2 + $0x38] sm:$0x7f] %vm71_vm2, %v64_v12  ;;  %72 = vst.msk [vmem:[#allocation2 + $0x18] sm:$0x7f] %vm71_vm2, %v61_v14  ;;  %v62_v16 = vsel %vm59_vm1, %v60_v7, %v61_v14  ;;  %48 = vrot.lane.b32.xlu1 %v17_v2, %s330_s18  ;;  %44 = vrot.lane.b32.xlu0 %v15_v8, %s330_s18  ;;  %v25_v19 = vsel %vm22_vm4, %v23_v6, %v24_v13  ;;  %v319_v20 = vld [vmem:[%s459_s1 + $0x10] sm:$0xff]   ;;  %v320_v21 = vld [vmem:[%s459_s1 + $0x18] sm:$0xff]  }
   0x7   :  { %38 = vst.msk [vmem:[#allocation2 + $0x30] sm:$0xff] %vm35_vm5, %v28_v18  ;;  %70 = vst.msk [vmem:[#allocation2 + $0x8] sm:$0xff] %vm35_vm5, %v62_v16  ;;  %194 = vmatpush1.bf16.msra.mxu0 %v318_v17  ;;  %303 = vmatpush1.bf16.msra.mxu1 %v318_v17  ;;  %v321_v22 = vld [vmem:[%s459_s1 + $0x20] sm:$0xff]   ;;  %v322_v29 = vld [vmem:[%s459_s1 + $0x28] sm:$0xff]   ;;  %vm54_vm6 = vcmask 1048064  }
   0x8   :  { %73 = vst.msk [vmem:[#allocation2 + $0x28] sm:$0xff] %vm35_vm5, %v65_v15  ;;  %36 = vst.msk [vmem:[#allocation2 + $0x10] sm:$0xff] %vm35_vm5, %v25_v19  ;;  %195 = vmatprep.subr.bf16.mxu0 %v329_v3  ;;  %292 = vmatprep.subr.bf16.mxu1 %v329_v3  ;;  %v323_v30 = vld [vmem:[%s459_s1 + $0x30] sm:$0xff]   ;;  %v324_v31 = vld [vmem:[%s459_s1 + $0x38] sm:$0xff]  }
   0x9   :  { %v325_v32 = vld [vmem:[%s459_s1 + $0x40] sm:$0xff]   ;;  %v326_v33 = vld [vmem:[%s459_s1 + $0x48] sm:$0xff]   ;;  %v327_v34 = vld [vmem:[%s459_s1 + $0x50] sm:$0xff]  }
   0xa   :  { %v328_v35 = vld [vmem:[%s459_s1 + $0x58] sm:$0xff]  }
   0xb   :  { %196 = vmatpush1.bf16.msra.mxu0 %v319_v20  ;;  %304 = vmatpush1.bf16.msra.mxu1 %v319_v20 }
   0xc   :  { %197 = vmatprep.subr.bf16.mxu0 %v329_v3  ;;  %293 = vmatprep.subr.bf16.mxu1 %v329_v3 }
   0xd   :  { %v80_v24 = vld [vmem:[#allocation2 + $0x18] sm:$0xff] }
   0xe   :  { %v78_v23 = vld [vmem:[#allocation2 + $0x8] sm:$0xff]  ;;  %v84_v26 = vld [vmem:[#allocation2 + $0x38] sm:$0xff] }
   0xf   :  { %198 = vmatpush1.bf16.msra.mxu0 %v320_v21  ;;  %305 = vmatpush1.bf16.msra.mxu1 %v320_v21  ;;  %v82_v25 = vld [vmem:[#allocation2 + $0x28] sm:$0xff]  ;;  %v86_v27 = vpack.c.bf16 %v80_v24, %v78_v23 }
  0x10   :  { %199 = vmatprep.subr.bf16.mxu0 %v329_v3  ;;  %294 = vmatprep.subr.bf16.mxu1 %v329_v3  ;;  %v88_v28 = vpack.c.bf16 %v84_v26, %v82_v25 }
  0x11   :  { %288 = vmatprep.mubr.msk.bf16.mxu0 %vm35_vm5, %v86_v27 }
  0x12   :  { %289 = vmatprep.mubr.msk.bf16.mxu1 %vm35_vm5, %v88_v28 }
  0x13   :  { %200 = vmatpush1.bf16.msra.mxu0 %v321_v22  ;;  %306 = vmatpush1.bf16.msra.mxu1 %v321_v22 }
  0x14   :  { %201 = vmatprep.subr.bf16.mxu0 %v329_v3  ;;  %295 = vmatprep.subr.bf16.mxu1 %v329_v3 }
  0x17   :  { %202 = vmatpush1.bf16.msra.mxu0 %v322_v29  ;;  %307 = vmatpush1.bf16.msra.mxu1 %v322_v29 }
  0x18   :  { %203 = vmatprep.subr.bf16.mxu0 %v329_v3  ;;  %296 = vmatprep.subr.bf16.mxu1 %v329_v3 }
  0x1b   :  { %204 = vmatpush1.bf16.msra.mxu0 %v323_v30  ;;  %308 = vmatpush1.bf16.msra.mxu1 %v323_v30 }
  0x1c   :  { %205 = vmatprep.subr.bf16.mxu0 %v329_v3  ;;  %297 = vmatprep.subr.bf16.mxu1 %v329_v3 }
  0x1f   :  { %206 = vmatpush1.bf16.msra.mxu0 %v324_v31  ;;  %309 = vmatpush1.bf16.msra.mxu1 %v324_v31 }
  0x20   :  { %207 = vmatprep.subr.bf16.mxu0 %v329_v3  ;;  %298 = vmatprep.subr.bf16.mxu1 %v329_v3 }
  0x23   :  { %208 = vmatpush1.bf16.msra.mxu0 %v325_v32  ;;  %310 = vmatpush1.bf16.msra.mxu1 %v325_v32 }
  0x24   :  { %209 = vmatprep.subr.bf16.mxu0 %v329_v3  ;;  %299 = vmatprep.subr.bf16.mxu1 %v329_v3 }
  0x27   :  { %210 = vmatpush1.bf16.msra.mxu0 %v326_v33  ;;  %311 = vmatpush1.bf16.msra.mxu1 %v326_v33 }
  0x28   :  { %211 = vmatprep.subr.bf16.mxu0 %v329_v3  ;;  %300 = vmatprep.subr.bf16.mxu1 %v329_v3 }
  0x2b   :  { %212 = vmatpush1.bf16.msra.mxu0 %v327_v34  ;;  %312 = vmatpush1.bf16.msra.mxu1 %v327_v34 }
  0x2c   :  { %213 = vmatprep.subr.bf16.mxu0 %v329_v3  ;;  %301 = vmatprep.subr.bf16.mxu1 %v329_v3 }
  0x2f   :  { %214 = vmatpush1.bf16.msra.mxu0 %v328_v35  ;;  %313 = vmatpush1.bf16.msra.mxu1 %v328_v35 }
  0x74   :  { %v47_v36 = vpop.permute.xlu1 %46  ;;  %v43_v37 = vpop.permute.xlu0 %42 }
  0x75   :  { %57 = vst.msk [vmem:[#allocation2 + $0x20] sm:$0xff] %vm54_vm6, %v47_v36  ;;  %55 = vst.msk [vmem:[#allocation2] sm:$0xff] %vm54_vm6, %v43_v37 }
  0x78   :  { %v49_v38 = vpop.permute.xlu1 %48  ;;  %v45_v39 = vpop.permute.xlu0 %44 }
  0x79   :  { %58 = vst.msk [vmem:[#allocation2 + $0x30] sm:$0xff] %vm54_vm6, %v49_v38  ;;  %56 = vst.msk [vmem:[#allocation2 + $0x10] sm:$0xff] %vm54_vm6, %v45_v39 }
  0x7c   :  { %v81_v40 = vld [vmem:[#allocation2 + $0x20] sm:$0xff] }
  0x7d   :  { %v77_v41 = vld [vmem:[#allocation2] sm:$0xff] }
  0x80   :  { %v79_v42 = vld [vmem:[#allocation2 + $0x10] sm:$0xff] }
  0x81   :  { %v83_v43 = vld [vmem:[#allocation2 + $0x30] sm:$0xff]  ;;  %v85_v44 = vpack.c.bf16 %v79_v42, %v77_v41 }
  0x82   :  { %v87_v45 = vpack.c.bf16 %v83_v43, %v81_v40 }
  0x83   :  { %224 = vmatmul.mubr.bf16.vlgmr.msra.gmra.mrb[0].mxu0 %v85_v44 }
  0x84   :  { %232 = vmatmul.mubr.bf16.vlgmr.msra.gmra.mrb[0].mxu1 %v87_v45 }
 0x156   :  { %v225_v46 = vpop.f32.mrb[0].mxu0 }
 0x157   :  { %v233_v47 = vpop.f32.mrb[0].mxu1  ;;  %240 = vst [vmem:[%s460_s2] sm:$0xff] %v225_v46  ;;  %v227_v48 = vpop.f32.mrb[1].mxu0  ;;  %v254_v52 = vmul.f32 %v225_v46, %v225_v46 }
 0x158   :  { %242 = vst [vmem:[%s460_s2 + $0x10] sm:$0xff] %v233_v47  ;;  %v235_v49 = vpop.f32.mrb[1].mxu1  ;;  %v228_v50 = vpop.f32.mrb[2].mxu0  ;;  %v256_v57 = vmul.f32 %v233_v47, %v233_v47 }
 0x159   :  { %v236_v51 = vpop.f32.mrb[2].mxu1  ;;  %241 = vst [vmem:[%s460_s2 + $0x8] sm:$0xff] %v228_v50  ;;  %v244_v53 = vadd.f32 %v228_v50, %v225_v46  ;;  %v255_v54 = vmul.f32 %v228_v50, %v228_v50  ;;  %v230_v55 = vpop.f32.mrb[3].mxu0 }
 0x15a   :  { %243 = vst [vmem:[%s460_s2 + $0x18] sm:$0xff] %v236_v51  ;;  %v238_v56 = vpop.f32.mrb[3].mxu1  ;;  %v257_v61 = vmul.f32 %v236_v51, %v236_v51 }
 0x15b   :  { %v258_v58 = vadd.f32 %v255_v54, %v254_v52  ;;  %v245_v59 = vadd.f32 %v244_v53, %v233_v47 }
 0x15d   :  { %v246_v60 = vadd.f32 %v245_v59, %v236_v51  ;;  %v259_v62 = vadd.f32 %v258_v58, %v256_v57 }
 0x15f   :  { %v247_v63 = vrot.slane %v246_v60, 4  ;;  %v260_v0 = vadd.f32 %v259_v62, %v257_v61 }
 0x161   :  { %v248_v1 = vadd.f32 %v247_v63, %v246_v60  ;;  %v261_v2 = vrot.slane %v260_v0, 4 }
 0x163   :  { %v249_v3 = vrot.slane %v248_v1, 2  ;;  %v262_v4 = vadd.f32 %v261_v2, %v260_v0 }
 0x165   :  { %v250_v5 = vadd.f32 %v249_v3, %v248_v1  ;;  %v263_v6 = vrot.slane %v262_v4, 2 }
 0x167   :  { %v251_v7 = vrot.slane %v250_v5, 1  ;;  %v264_v8 = vadd.f32 %v263_v6, %v262_v4 }
 0x169   :  { %v252_v9 = vadd.f32 %v251_v7, %v250_v5  ;;  %v265_v10 = vrot.slane %v264_v8, 1 }
 0x16b   :  { %253 = vst [vmem:[%s461_s3] sm:$0x1] %v252_v9  ;;  %v266_v11 = vadd.f32 %v265_v10, %v264_v8 }
 0x16d   :  { %267 = vst [vmem:[%s461_s3 + $0x1] sm:$0x1] %v266_v11 }

// kernel: resblock_forward.4
= control target key start
LH: loop header
LB: loop body
LE: loop exit
PB: predicated region body
PF: predicated region fallthrough
CT: control target
= control target key end

     0   :  { %v553_v1 = vmov 0.0   ;;  %vm62_vm4 = vcmask 1040384   ;;  %vm83_vm5 = vcmask 1046528   ;;  %s696_s3 = inlined_call_operand.vmem [shape: bf16[384,128], index: 3, kind: input, shape index: {}]   ;;  %s697_s0 = inlined_call_operand.vmem [shape: f32[2,16,128], index: 0, kind: input, shape index: {}]   ;;  %s698_s1 = inlined_call_operand.vmem [shape: f32[1,128], index: 1, kind: input, shape index: {}]   ;;  %s699_s2 = inlined_call_operand.vmem [shape: f32[1,128], index: 2, kind: input, shape index: {}]   ;;  %s700_s4 = inlined_call_operand.vmem [shape: f32[2,16,128], index: 4, kind: output, shape index: {0}]   ;;  %s701_s5 = inlined_call_operand.vmem [shape: f32[1,2,128], index: 5, kind: output, shape index: {1}]  }
   0x1   :  { %v529_v0 = vld [vmem:[%s696_s3 + $0x40] sm:$0xff]   ;;  %77 = vst [vmem:[#allocation2] sm:$0x1] %v553_v1  ;;  %78 = vst [vmem:[#allocation2 + $0x30] sm:$0x1] %v553_v1  ;;  %v532_v4 = vld [vmem:[%s696_s3 + $0x48] sm:$0xff]  }
   0x2   :  { %98 = vst [vmem:[#allocation2 + $0x2f] sm:$0x1] %v553_v1  ;;  %99 = vst [vmem:[#allocation2 + $0x5f] sm:$0x1] %v553_v1  ;;  %v530_v2 = vld [vmem:[%s696_s3] sm:$0xff]   ;;  %470 = vmatprep.subr.bf16.mxu0 %v529_v0  ;;  %v533_v5 = vld [vmem:[%s696_s3 + $0x8] sm:$0xff]  }
   0x3   :  { %v531_v3 = vld [vmem:[%s696_s3 + $0x80] sm:$0xff]   ;;  %471 = vmatpush3.bf16.msra.mxu0 %v530_v2  ;;  %v534_v6 = vld [vmem:[%s696_s3 + $0x88] sm:$0xff]   ;;  %v535_v7 = vld [vmem:[%s696_s3 + $0x50] sm:$0xff]  }
   0x4   :  { %508 = vmatprep.subr.bf16.mxu1 %v531_v3  ;;  %472 = vmatprep.subr.bf16.mxu0 %v532_v4  ;;  %v536_v8 = vld [vmem:[%s696_s3 + $0x10] sm:$0xff]   ;;  %v538_v10 = vld [vmem:[%s696_s3 + $0x58] sm:$0xff]   ;;  %v541_v13 = vld [vmem:[%s696_s3 + $0x60] sm:$0xff]  }
   0x5   :  { %509 = vmatpush3.bf16.msra.mxu1 %v531_v3  ;;  %v537_v9 = vld [vmem:[%s696_s3 + $0x90] sm:$0xff]   ;;  %v539_v11 = vld [vmem:[%s696_s3 + $0x18] sm:$0xff]   ;;  %v543_v14 = vld [vmem:[%s696_s3 + $0xa0] sm:$0xff]  }
   0x6   :  { %510 = vmatprep.subr.bf16.mxu1 %v534_v6  ;;  %v540_v12 = vld [vmem:[%s696_s3 + $0x98] sm:$0xff]   ;;  %v542_v15 = vld [vmem:[%s696_s3 + $0x20] sm:$0xff]   ;;  %v544_v16 = vld [vmem:[%s696_s3 + $0x68] sm:$0xff]  }
   0x7   :  { %473 = vmatpush3.bf16.msra.mxu0 %v533_v5  ;;  %v546_v17 = vld [vmem:[%s696_s3 + $0xa8] sm:$0xff]   ;;  %v547_v19 = vld [vmem:[%s696_s3 + $0x70] sm:$0xff]   ;;  %v550_v22 = vld [vmem:[%s696_s3 + $0x78] sm:$0xff]  }
   0x8   :  { %474 = vmatprep.subr.bf16.mxu0 %v535_v7  ;;  %v545_v18 = vld [vmem:[%s696_s3 + $0x28] sm:$0xff]   ;;  %v548_v20 = vld [vmem:[%s696_s3 + $0x30] sm:$0xff]   ;;  %v20_v23 = vld [vmem:[%s697_s0] sm:$0xff] }
   0x9   :  { %511 = vmatpush3.bf16.msra.mxu1 %v534_v6  ;;  %v549_v21 = vld [vmem:[%s696_s3 + $0xb0] sm:$0xff]   ;;  %v21_v24 = vld [vmem:[%s697_s0 + $0x8] sm:$0xff]  ;;  %v444_v26 = vld [vmem:[%s698_s1] ss:$0 sm:$0xff] }
   0xa   :  { %512 = vmatprep.subr.bf16.mxu1 %v537_v9  ;;  %v22_v25 = vld [vmem:[%s697_s0 + $0x10] sm:$0xff]  ;;  %v445_v27 = vld [vmem:[%s699_s2] ss:$0 sm:$0xff]  ;;  %v23_v28 = vld [vmem:[%s697_s0 + $0x18] sm:$0xff]  ;;  %v31_v30 = vmul.f32 %v444_v26, %v20_v23  ;;  %v32_v31 = vmul.f32 %v444_v26, %v21_v24 }
   0xb   :  { %475 = vmatpush3.bf16.msra.mxu0 %v536_v8  ;;  %v552_v29 = vld [vmem:[%s696_s3 + $0xb8] sm:$0xff]   ;;  %v33_v32 = vmul.f32 %v444_v26, %v22_v25  ;;  %v34_v33 = vmul.f32 %v444_v26, %v23_v28 }
   0xc   :  { %476 = vmatprep.subr.bf16.mxu0 %v538_v10  ;;  %v551_v34 = vld [vmem:[%s696_s3 + $0x38] sm:$0xff]   ;;  %v42_v35 = vadd.f32 %v445_v27, %v31_v30  ;;  %v43_v36 = vadd.f32 %v445_v27, %v32_v31 }
   0xd   :  { %513 = vmatpush3.bf16.msra.mxu1 %v537_v9  ;;  %v44_v37 = vadd.f32 %v445_v27, %v33_v32  ;;  %v45_v38 = vadd.f32 %v445_v27, %v34_v33 }
   0xe   :  { %514 = vmatprep.subr.bf16.mxu1 %v540_v12  ;;  %vm46_vm0 = vcmp.gt.f32.partialorder %v42_v35, 0.0  ;;  %vm47_vm1 = vcmp.gt.f32.partialorder %v43_v36, 0.0  ;;  %v50_v39 = vmul.f32 0.1, %v42_v35  ;;  %v51_v40 = vmul.f32 0.1, %v43_v36 }
   0xf   :  { %477 = vmatpush3.bf16.msra.mxu0 %v539_v11  ;;  %vm48_vm2 = vcmp.gt.f32.partialorder %v44_v37, 0.0  ;;  %vm49_vm3 = vcmp.gt.f32.partialorder %v45_v38, 0.0  ;;  %v52_v41 = vmul.f32 0.1, %v44_v37  ;;  %v53_v42 = vmul.f32 0.1, %v45_v38 }
  0x10   :  { %478 = vmatprep.subr.bf16.mxu0 %v541_v13  ;;  %v54_v43 = vsel %vm46_vm0, %v42_v35, %v50_v39  ;;  %v55_v44 = vsel %vm47_vm1, %v43_v36, %v51_v40 }
  0x11   :  { %515 = vmatpush3.bf16.msra.mxu1 %v540_v12  ;;  %v63_v45 = vrot.slane %v54_v43, 7  ;;  %v64_v46 = vrot.slane %v55_v44, 7  ;;  %v84_v47 = vrot.slane %v54_v43, 1  ;;  %v113_v48 = vpack.c.bf16 %v55_v44, %v54_v43 }
  0x12   :  { %516 = vmatprep.subr.bf16.mxu1 %v543_v14  ;;  %v85_v49 = vrot.slane %v55_v44, 1  ;;  %v56_v50 = vsel %vm48_vm2, %v44_v37, %v52_v41  ;;  %v57_v51 = vsel %vm49_vm3, %v45_v38, %v53_v42 }
  0x13   :  { %479 = vmatpush3.bf16.msra.mxu0 %v542_v15  ;;  %342 = vmatprep.mubr.bf16.mxu0 %v113_v48  ;;  %73 = vst [vmem:[#allocation2] sm:$0xfe] %v63_v45  ;;  %v65_v52 = vsel %vm62_vm4, %v63_v45, %v64_v46  ;;  %v87_v53 = vrot.slane %v56_v50, 1  ;;  %v88_v54 = vrot.slane %v57_v51, 1  ;;  %v66_v56 = vrot.slane %v56_v50, 7 }
  0x14   :  { %480 = vmatprep.subr.bf16.mxu0 %v544_v16  ;;  %v86_v55 = vsel %vm83_vm5, %v84_v47, %v85_v49  ;;  %95 = vst [vmem:[#allocation2 + $0x28] sm:$0x7f] %v85_v49  ;;  %v67_v57 = vrot.slane %v57_v51, 7  ;;  %v116_v61 = vpack.c.bf16 %v57_v51, %v56_v50 }
  0x15   :  { %517 = vmatpush3.bf16.msra.mxu1 %v543_v14  ;;  %v89_v58 = vsel %vm83_vm5, %v87_v53, %v88_v54  ;;  %97 = vst [vmem:[#allocation2 + $0x58] sm:$0x7f] %v88_v54  ;;  %75 = vst [vmem:[#allocation2 + $0x30] sm:$0xfe] %v66_v56 }
  0x16   :  { %518 = vmatprep.subr.bf16.mxu1 %v546_v17  ;;  %v68_v59 = vsel %vm62_vm4, %v66_v56, %v67_v57 }
  0x17   :  { %481 = vmatpush3.bf16.msra.mxu0 %v545_v18 }
  0x18   :  { %482 = vmatprep.subr.bf16.mxu0 %v547_v19 }
  0x19   :  { %519 = vmatpush3.bf16.msra.mxu1 %v546_v17 }
  0x1a   :  { %520 = vmatprep.subr.bf16.mxu1 %v549_v21  ;;  %v100_v60 = vld [vmem:[#allocation2] sm:$0xff] }
  0x1b   :  { %483 = vmatpush3.bf16.msra.mxu0 %v548_v20  ;;  %v112_v62 = vpack.c.bf16 %v65_v52, %v100_v60  ;;  %v105_v63 = vld [vmem:[#allocation2 + $0x28] sm:$0xff] }
  0x1c   :  { %484 = vmatprep.subr.bf16.mxu0 %v550_v22  ;;  %v114_v0 = vpack.c.bf16 %v105_v63, %v86_v55  ;;  %v111_v1 = vld [vmem:[#allocation2 + $0x58] sm:$0xff]  ;;  %v106_v3 = vld [vmem:[#allocation2 + $0x30] sm:$0xff] }
  0x1d   :  { %521 = vmatpush3.bf16.msra.mxu1 %v549_v21  ;;  %v117_v2 = vpack.c.bf16 %v111_v1, %v89_v58  ;;  %v115_v4 = vpack.c.bf16 %v68_v59, %v106_v3 }
  0x1e   :  { %522 = vmatprep.subr.bf16.mxu1 %v552_v29  ;;  %524 = vmatprep.mubr.bf16.mxu1 %v114_v0 }
  0x1f   :  { %485 = vmatpush3.bf16.msra.mxu0 %v551_v34 }
  0x21   :  { %523 = vmatpush3.bf16.msra.mxu1 %v552_v29 }
  0x22   :  { %343 = vmatmul.mubr.bf16.vlgmr.msra.gmra.mrb[0].mxu0 %v112_v62 }
  0x23   :  { %350 = vmatprep.mubr.bf16.mxu0 %v116_v61 }
  0x24   :  { %525 = vmatmul.mubr.bf16.vlgmr.msra.gmra.mrb[0].mxu1 %v117_v2 }
  0x2a   :  { %351 = vmatmul.mubr.bf16.gmra.mrb[4].mxu0 %v115_v4 }
  0xf5   :  { %v486_v5 = vpop.f32.mrb[0].mxu0 }
  0xf6   :  { %v487_v6 = vpop.f32.mrb[1].mxu0 }
  0xf7   :  { %v488_v7 = vadd.f32 %v487_v6, %v486_v5  ;;  %v489_v8 = vpop.f32.mrb[2].mxu0  ;;  %v526_v9 = vpop.f32.mrb[0].mxu1 }
  0xf8   :  { %v490_v10 = vpop.f32.mrb[3].mxu0  ;;  %v393_v11 = vpop.f32.mrb[1].mxu1 }
  0xf9   :  { %v491_v12 = vadd.f32 %v490_v10, %v489_v8  ;;  %v394_v13 = vadd.f32 %v488_v7, %v393_v11  ;;  %v527_v14 = vpop.f32.mrb[2].mxu1 }
  0xfa   :  { %v396_v15 = vpop.f32.mrb[3].mxu1 }
  0xfb   :  { %408 = vst [vmem:[%s700_s4] sm:$0xff] %v394_v13  ;;  %v397_v16 = vadd.f32 %v491_v12, %v396_v15  ;;  %v422_v17 = vmul.f32 %v394_v13, %v394_v13 }
  0xfd   :  { %409 = vst [vmem:[%s700_s4 + $0x8] sm:$0xff] %v397_v16  ;;  %v412_v18 = vadd.f32 %v397_v16, %v394_v13  ;;  %v423_v19 = vmul.f32 %v397_v16, %v397_v16  ;;  %v492_v20 = vpop.f32.mrb[4].mxu0 }
  0xfe   :  { %v493_v21 = vpop.f32.mrb[5].mxu0 }
  0xff   :  { %v426_v22 = vadd.f32 %v423_v19, %v422_v17  ;;  %v494_v23 = vadd.f32 %v493_v21, %v492_v20  ;;  %v495_v24 = vpop.f32.mrb[6].mxu0 }
 0x100   :  { %v496_v25 = vpop.f32.mrb[7].mxu0 }
 0x101   :  { %v402_v26 = vadd.f32 %v526_v9, %v494_v23  ;;  %v497_v27 = vadd.f32 %v496_v25, %v495_v24 }
 0x103   :  { %410 = vst [vmem:[%s700_s4 + $0x10] sm:$0xff] %v402_v26  ;;  %v413_v28 = vadd.f32 %v412_v18, %v402_v26  ;;  %v424_v29 = vmul.f32 %v402_v26, %v402_v26  ;;  %v405_v30 = vadd.f32 %v527_v14, %v497_v27 }
 0x105   :  { %v427_v31 = vadd.f32 %v426_v22, %v424_v29  ;;  %411 = vst [vmem:[%s700_s4 + $0x18] sm:$0xff] %v405_v30  ;;  %v414_v32 = vadd.f32 %v413_v28, %v405_v30  ;;  %v425_v33 = vmul.f32 %v405_v30, %v405_v30 }
 0x107   :  { %v415_v34 = vrot.slane %v414_v32, 4  ;;  %v428_v35 = vadd.f32 %v427_v31, %v425_v33 }
 0x109   :  { %v416_v36 = vadd.f32 %v415_v34, %v414_v32  ;;  %v429_v37 = vrot.slane %v428_v35, 4 }
 0x10b   :  { %v417_v38 = vrot.slane %v416_v36, 2  ;;  %v430_v39 = vadd.f32 %v429_v37, %v428_v35 }
 0x10d   :  { %v418_v40 = vadd.f32 %v417_v38, %v416_v36  ;;  %v431_v41 = vrot.slane %v430_v39, 2 }
 0x10f   :  { %v419_v42 = vrot.slane %v418_v40, 1  ;;  %v432_v43 = vadd.f32 %v431_v41, %v430_v39 }
 0x111   :  { %v420_v44 = vadd.f32 %v419_v42, %v418_v40  ;;  %v433_v45 = vrot.slane %v432_v43, 1 }
 0x113   :  { %421 = vst [vmem:[%s701_s5] sm:$0x1] %v420_v44  ;;  %v434_v46 = vadd.f32 %v433_v45, %v432_v43 }
 0x115   :  { %435 = vst [vmem:[%s701_s5 + $0x1] sm:$0x1] %v434_v46 }

// kernel: resblock_forward.5
= control target key start
LH: loop header
LB: loop body
LE: loop exit
PB: predicated region body
PF: predicated region fallthrough
CT: control target
= control target key end

     0   :  { %s190_s0 = inlined_call_operand.vmem [shape: f32[2,16,128], index: 0, kind: input, shape index: {}]   ;;  %s191_s1 = inlined_call_operand.vmem [shape: f32[2,16,128], index: 1, kind: input, shape index: {}]   ;;  %s192_s2 = inlined_call_operand.vmem [shape: f32[1,128], index: 2, kind: input, shape index: {}]   ;;  %s193_s3 = inlined_call_operand.vmem [shape: f32[1,128], index: 3, kind: input, shape index: {}]   ;;  %s194_s4 = inlined_call_operand.vmem [shape: f32[1,128], index: 4, kind: input, shape index: {}]   ;;  %s195_s5 = inlined_call_operand.vmem [shape: f32[1,128], index: 5, kind: input, shape index: {}]   ;;  %s196_s6 = inlined_call_operand.vmem [shape: f32[2,16,128], index: 6, kind: output, shape index: {}]  }
   0x1   :  { %v23_v0 = vld [vmem:[%s190_s0] sm:$0xff]  ;;  %v24_v8 = vld [vmem:[%s190_s0 + $0x8] sm:$0xff]  ;;  %v25_v10 = vld [vmem:[%s190_s0 + $0x10] sm:$0xff] }
   0x2   :  { %v103_v1 = vld [vmem:[%s192_s2] ss:$0 sm:$0xff]  ;;  %v50_v9 = vld [vmem:[%s191_s1 + $0x8] sm:$0xff]  ;;  %v51_v15 = vld [vmem:[%s191_s1 + $0x10] sm:$0xff] }
   0x3   :  { %v104_v2 = vld [vmem:[%s193_s3] ss:$0 sm:$0xff]  ;;  %v34_v3 = vmul.f32 %v103_v1, %v23_v0  ;;  %v35_v12 = vmul.f32 %v103_v1, %v24_v8  ;;  %v36_v14 = vmul.f32 %v103_v1, %v25_v10  ;;  %v26_v16 = vld [vmem:[%s190_s0 + $0x18] sm:$0xff] }
   0x4   :  { %v49_v4 = vld [vmem:[%s191_s1] sm:$0xff]  ;;  %v52_v17 = vld [vmem:[%s191_s1 + $0x18] sm:$0xff]  ;;  %v37_v20 = vmul.f32 %v103_v1, %v26_v16 }
   0x5   :  { %v105_v5 = vld [vmem:[%s194_s4] ss:$0 sm:$0xff]  ;;  %v45_v11 = vadd.f32 %v104_v2, %v34_v3  ;;  %v46_v22 = vadd.f32 %v104_v2, %v35_v12  ;;  %v47_v24 = vadd.f32 %v104_v2, %v36_v14 }
   0x6   :  { %v106_v6 = vld [vmem:[%s195_s5] ss:$0 sm:$0xff]  ;;  %v60_v7 = vmul.f32 %v105_v5, %v49_v4  ;;  %v61_v13 = vmul.f32 %v105_v5, %v50_v9  ;;  %v62_v19 = vmul.f32 %v105_v5, %v51_v15  ;;  %v63_v21 = vmul.f32 %v105_v5, %v52_v17 }
   0x7   :  { %v48_v27 = vadd.f32 %v104_v2, %v37_v20 }
   0x8   :  { %v71_v18 = vadd.f32 %v106_v6, %v60_v7  ;;  %v72_v23 = vadd.f32 %v106_v6, %v61_v13  ;;  %v73_v26 = vadd.f32 %v106_v6, %v62_v19  ;;  %v74_v28 = vadd.f32 %v106_v6, %v63_v21 }
   0xa   :  { %v75_v25 = vadd.f32 %v71_v18, %v45_v11  ;;  %v76_v29 = vadd.f32 %v72_v23, %v46_v22  ;;  %v77_v31 = vadd.f32 %v73_v26, %v47_v24  ;;  %v78_v32 = vadd.f32 %v74_v28, %v48_v27 }
   0xc   :  { %vm79_vm0 = vcmp.gt.f32.partialorder %v75_v25, 0.0  ;;  %v83_v30 = vmul.f32 0.1, %v75_v25  ;;  %vm80_vm1 = vcmp.gt.f32.partialorder %v76_v29, 0.0  ;;  %v84_v33 = vmul.f32 0.1, %v76_v29 }
   0xd   :  { %vm81_vm2 = vcmp.gt.f32.partialorder %v77_v31, 0.0  ;;  %v85_v35 = vmul.f32 0.1, %v77_v31  ;;  %vm82_vm3 = vcmp.gt.f32.partialorder %v78_v32, 0.0  ;;  %v86_v38 = vmul.f32 0.1, %v78_v32 }
   0xe   :  { %v87_v34 = vsel %vm79_vm0, %v75_v25, %v83_v30  ;;  %v88_v37 = vsel %vm80_vm1, %v76_v29, %v84_v33 }
   0xf   :  { %v91_v36 = vadd.f32 %v87_v34, %v45_v11  ;;  %v92_v39 = vadd.f32 %v88_v37, %v46_v22  ;;  %v89_v40 = vsel %vm81_vm2, %v77_v31, %v85_v35  ;;  %v90_v42 = vsel %vm82_vm3, %v78_v32, %v86_v38 }
  0x10   :  { %v93_v41 = vadd.f32 %v89_v40, %v47_v24  ;;  %v94_v43 = vadd.f32 %v90_v42, %v48_v27 }
  0x11   :  { %95 = vst [vmem:[%s196_s6] sm:$0xff] %v91_v36  ;;  %96 = vst [vmem:[%s196_s6 + $0x8] sm:$0xff] %v92_v39 }
  0x12   :  { %97 = vst [vmem:[%s196_s6 + $0x10] sm:$0xff] %v93_v41  ;;  %98 = vst [vmem:[%s196_s6 + $0x18] sm:$0xff] %v94_v43 }

</bundles_post_ra>
